<compile_context>
chip_gen: v7x
topology: tpu7x:2x2x1
jax: 0.10.0
libtpu: 0.0.40
codegen_flags: <defaults>
</compile_context>

<pallas_src>
import functools

import jax
import jax.numpy as jnp
from jax.experimental import pallas as pl
from jax.experimental.pallas import tpu as pltpu


def _silu_ref(x):
    return x * jax.nn.sigmoid(x)


def _round_up(x, m):
    return (x + m - 1) // m * m


def _denoising_kernel(x_ref, w1_ref, b1_ref, w2_ref, b2_ref, w3_ref, sp_ref,
                      o_ref, *, act_dtype):
    TA, S, C = x_ref.shape
    # x arrives f32; cast to bf16 here (VALU filler) for the MXU feed.
    x = x_ref[...].reshape(TA * S, C).astype(jnp.bfloat16)

    # fc1: bf16 MXU matmul with f32 accumulation; bias add in f32.
    h = jnp.dot(x, w1_ref[...], preferred_element_type=jnp.float32) + b1_ref[...]
    h = h.astype(act_dtype)
    a = 0.5 * h * (1.0 + jnp.tanh(0.5 * h))        # SiLU, single EUP op

    # fc2: the (possibly bf16) activations feed the MXU directly.
    h = jnp.dot(a.astype(jnp.bfloat16), w2_ref[...],
                preferred_element_type=jnp.float32) + b2_ref[...]
    h = h.astype(act_dtype)
    a = 0.5 * h * (1.0 + jnp.tanh(0.5 * h))

    # fc3 (no bias): y[a, s] = sum_c a[a, s, c] * w3[c]  -- in-lane multiply +
    # cross-lane (XLU) reduce with f32 accumulation; avoids a 1-lane matvec.
    a3 = a.reshape(TA, S, C)                       # free split of leading dim
    w3 = w3_ref[...].reshape(1, 1, C).astype(act_dtype)
    y = jnp.sum((a3 * w3).astype(jnp.float32), axis=-1)         # (TA, S) f32

    # forces: sphere points already carry 1/S and are zero-padded to 128 lanes,
    # so this is a dense, unmasked (TA, 128) store.  Kept f32 for accuracy.
    o_ref[...] = jnp.dot(y, sp_ref[...],
                         preferred_element_type=jnp.float32).astype(o_ref.dtype)


def _chip_config():
    """Generation-aware activation dtype and VMEM / tile budgets."""
    kind = ""
    try:
        dev = jax.devices()[0]
        if dev.platform == "tpu":
            kind = dev.device_kind.lower()
    except Exception:
        kind = ""
    # v5e and older have no bf16 VPU/EUP: keep the activation epilogue in f32.
    old_gen = any(t in kind for t in ("v2", "v3", "v4", "v5"))
    act_dtype = jnp.float32 if old_gen else jnp.bfloat16
    if old_gen or "v6" in kind:
        # 128 MiB physical VMEM per TensorCore: large tiles amortize the
        # ~0.35 us per-grid-step overhead.
        return dict(act_dtype=act_dtype, target_rows=8192,
                    vmem_budget=80 * 1024 * 1024,
                    vmem_limit=100 * 1024 * 1024, min_steps=2)
    # v7x (64 MiB VMEM per TC, 2 TCs) and unknown chips: smaller tiles and
    # >=4 steps per core so BlockSpec double-buffering hides the x DMA.
    return dict(act_dtype=act_dtype, target_rows=2048,
                vmem_budget=40 * 1024 * 1024,
                vmem_limit=48 * 1024 * 1024, min_steps=8)


def _choose_tiling(num_atoms, s_pad, c_pad, *, target_rows, vmem_budget_bytes,
                   min_steps):
    """Pick (atoms-per-tile, padded atom count): step count first, then TA."""
    a8 = _round_up(max(num_atoms, 1), 8)

    def tile_bytes(ta):
        rows = ta * s_pad
        x_bytes = 2 * rows * c_pad * 4                 # double-buffered f32 x
        act_bytes = rows * c_pad * (4 + 4 + 2 + 2)     # f32 h/tmp + bf16 copies
        out_bytes = 2 * ta * 128 * 4                   # double-buffered output
        const_bytes = 2 * (2 * c_pad * c_pad * 2 + 3 * c_pad * 4
                           + s_pad * 128 * 4)
        return x_bytes + act_bytes + out_bytes + const_bytes

    # Largest tile satisfying the target matmul M-rows and the VMEM budget.
    ta_cap = min(_round_up(max(pl.cdiv(target_rows, s_pad), 1), 8), a8)
    while ta_cap > 8 and tile_bytes(ta_cap) > vmem_budget_bytes:
        ta_cap -= 8
    ta_cap = max(ta_cap, 8)

    # Pick the step count first so atom padding stays small.
    nsteps = max(min_steps, pl.cdiv(a8, ta_cap))
    nsteps = min(nsteps, pl.cdiv(a8, 8))               # >= 8 atoms per step
    ta = _round_up(pl.cdiv(a8, nsteps), 8)
    a_pad = _round_up(a8, ta)
    return ta, a_pad


def denoising_block_forward(x_pt, sphere_points, params, *, num_sphere_samples,
                            atoms_per_tile=None):
    """x_pt: (A*S, C) f32, sphere_points: (S, 3) f32 -> forces (A, 3) f32."""
    S = num_sphere_samples
    C = x_pt.shape[-1]
    A = x_pt.shape[0] // S
    assert A * S == x_pt.shape[0]

    C_pad = _round_up(C, 128)
    S_pad = _round_up(S, 8)

    cfg = _chip_config()
    if atoms_per_tile is not None:
        TA = max(_round_up(atoms_per_tile, 8), 8)
        A_pad = _round_up(A, TA)
    else:
        TA, A_pad = _choose_tiling(A, S_pad, C_pad,
                                   target_rows=cfg["target_rows"],
                                   vmem_budget_bytes=cfg["vmem_budget"],
                                   min_steps=cfg["min_steps"])

    # x stays f32 (no wrapper-side dtype convert).  Zero-pad atoms / samples /
    # channels: zero channels stay exactly zero through both Linear+SiLU
    # stages, zero samples are cancelled by zero sphere points, padded atoms
    # are sliced off at the end.
    x3 = x_pt.reshape(A, S, C)
    if (A_pad, S_pad, C_pad) != (A, S, C):
        x3 = jnp.pad(x3, ((0, A_pad - A), (0, S_pad - S), (0, C_pad - C)))

    dc = C_pad - C
    w1 = jnp.pad(params["w1"], ((0, dc), (0, dc))).astype(jnp.bfloat16)
    w2 = jnp.pad(params["w2"], ((0, dc), (0, dc))).astype(jnp.bfloat16)
    b1 = jnp.pad(params["b1"], ((0, dc),)).reshape(1, C_pad).astype(jnp.float32)
    b2 = jnp.pad(params["b2"], ((0, dc),)).reshape(1, C_pad).astype(jnp.float32)
    w3 = jnp.pad(params["w3"].reshape(1, C),
                 ((0, 0), (0, dc))).astype(jnp.float32)

    # Fold 1/S into the sphere points; pad samples to S_pad and lanes to 128 so
    # the kernel output store is lane-dense.
    sp = sphere_points.astype(jnp.float32) / float(S)
    sp = jnp.pad(sp, ((0, S_pad - S), (0, 128 - sp.shape[-1])))

    grid = (A_pad // TA,)
    const = lambda shape: pl.BlockSpec(shape, lambda i: (0,) * len(shape))
    kernel = functools.partial(_denoising_kernel, act_dtype=cfg["act_dtype"])

    out = pl.pallas_call(
        kernel,
        out_shape=jax.ShapeDtypeStruct((A_pad, 128), jnp.float32),
        grid_spec=pltpu.PrefetchScalarGridSpec(
            num_scalar_prefetch=0,
            grid=grid,
            in_specs=[
                pl.BlockSpec((TA, S_pad, C_pad), lambda i: (i, 0, 0)),  # x f32
                const((C_pad, C_pad)),   # w1 (bf16)
                const((1, C_pad)),       # b1 (f32)
                const((C_pad, C_pad)),   # w2 (bf16)
                const((1, C_pad)),       # b2 (f32)
                const((1, C_pad)),       # w3 (f32)
                const((S_pad, 128)),     # sphere_points * (1/S), lane-padded
            ],
            out_specs=pl.BlockSpec((TA, 128), lambda i: (i, 0)),
        ),
        compiler_params=pltpu.CompilerParams(
            dimension_semantics=("parallel",),
            vmem_limit_bytes=cfg["vmem_limit"]),
    )(x3, w1, b1, w2, b2, w3, sp)

    return out[:A, :3]


def _init_params(key, num_channels):
    """Deterministic synthetic parameters (Linear weights stored as (in, out))."""
    k1, k2, k3, k4, k5 = jax.random.split(key, 5)
    C = num_channels
    scale = 1.0 / jnp.sqrt(C)
    return {
        "w1": jax.random.uniform(k1, (C, C), jnp.float32, -scale, scale),
        "b1": jax.random.uniform(k2, (C,), jnp.float32, -scale, scale),
        "w2": jax.random.uniform(k3, (C, C), jnp.float32, -scale, scale),
        "b2": jax.random.uniform(k4, (C,), jnp.float32, -scale, scale),
        "w3": jax.random.uniform(k5, (C, 1), jnp.float32, -scale, scale),
    }


def _reference_forward(x_pt, sphere_points, params, num_sphere_samples):
    """Pure-JAX f32 reference mirroring the PyTorch forward."""
    h = _silu_ref(x_pt @ params["w1"] + params["b1"])
    h = _silu_ref(h @ params["w2"] + params["b2"])
    y = h @ params["w3"]                                    # (A*S, 1)
    y = y.reshape(-1, num_sphere_samples, 1)
    forces = y * sphere_points.reshape(1, num_sphere_samples, 3)
    return jnp.sum(forces, axis=1) / num_sphere_samples


if __name__ == "__main__":
    num_channels = 32
    num_sphere_samples = 8
    num_atoms = 16

    key = jax.random.PRNGKey(0)
    kx, ksp, kp = jax.random.split(key, 3)

    x_pt = jax.random.normal(
        kx, (num_atoms * num_sphere_samples, num_channels), jnp.float32)
    sphere_points = jax.random.normal(
        ksp, (num_sphere_samples, 3), jnp.float32)
    params = _init_params(kp, num_channels)

    forces = denoising_block_forward(
        x_pt, sphere_points, params, num_sphere_samples=num_sphere_samples)
    forces = jax.block_until_ready(forces)

    ref = _reference_forward(x_pt, sphere_points, params, num_sphere_samples)
    assert forces.shape == (num_atoms, 3)
    # bf16 MXU inputs (+ bf16 activation epilogue on v6e/v7x) => bf16-level
    # comparison tolerance against the f32 reference.
    err = float(jnp.max(jnp.abs(forces - ref)))
    assert jnp.allclose(forces, ref, atol=2e-2, rtol=2e-2), err

    print("KERNEL_OK")
</pallas_src>

<mosaic_0001>
module attributes {stable_mosaic.version = 11 : i64} {
  func.func @_denoising_kernel(%arg0: i32, %arg1: memref<8x8x128xf32, #tpu.memory_space<vmem>>, %arg2: memref<128x128xbf16, #tpu.memory_space<vmem>>, %arg3: memref<1x128xf32, #tpu.memory_space<vmem>>, %arg4: memref<128x128xbf16, #tpu.memory_space<vmem>>, %arg5: memref<1x128xf32, #tpu.memory_space<vmem>>, %arg6: memref<1x128xf32, #tpu.memory_space<vmem>>, %arg7: memref<8x128xf32, #tpu.memory_space<vmem>>, %arg8: memref<8x128xf32, #tpu.memory_space<vmem>>) attributes {dimension_semantics = [#tpu.dimension_semantics<parallel>], iteration_bounds = array<i64: 2>, scalar_prefetch = 0 : i64, scratch_operands = 0 : i64, tpu.core_type = #tpu.core_type<tc>, window_params = [{transform_indices = @transform_0, window_bounds = array<i64: 8, 8, 128>}, {pipeline_mode = #tpu.pipeline_mode<synchronous>, transform_indices = @transform_1, window_bounds = array<i64: 128, 128>}, {pipeline_mode = #tpu.pipeline_mode<synchronous>, transform_indices = @transform_2, window_bounds = array<i64: 1, 128>}, {pipeline_mode = #tpu.pipeline_mode<synchronous>, transform_indices = @transform_3, window_bounds = array<i64: 128, 128>}, {pipeline_mode = #tpu.pipeline_mode<synchronous>, transform_indices = @transform_4, window_bounds = array<i64: 1, 128>}, {pipeline_mode = #tpu.pipeline_mode<synchronous>, transform_indices = @transform_5, window_bounds = array<i64: 1, 128>}, {pipeline_mode = #tpu.pipeline_mode<synchronous>, transform_indices = @transform_6, window_bounds = array<i64: 8, 128>}, {transform_indices = @transform_7, window_bounds = array<i64: 8, 128>}]} {
    %c0 = arith.constant 0 : index
    %c0_0 = arith.constant 0 : index
    %c0_1 = arith.constant 0 : index
    %0 = vector.load %arg1[%c0, %c0_0, %c0_1] : memref<8x8x128xf32, #tpu.memory_space<vmem>>, vector<8x8x128xf32>
    %1 = vector.shape_cast %0 : vector<8x8x128xf32> to vector<64x128xf32>
    %2 = arith.truncf %1 : vector<64x128xf32> to vector<64x128xbf16>
    %c0_2 = arith.constant 0 : index
    %c0_3 = arith.constant 0 : index
    %3 = vector.load %arg2[%c0_2, %c0_3] : memref<128x128xbf16, #tpu.memory_space<vmem>>, vector<128x128xbf16>
    %cst = arith.constant dense<0.000000e+00> : vector<64x128xf32>
    %4 = tpu.matmul %2, %3, %cst {dimension_numbers = #tpu.dot_dimension_numbers<[1], [0], [0], [1], [0, 0, 1, 1], [], []>} : vector<64x128xbf16>, vector<128x128xbf16>, vector<64x128xf32> -> vector<64x128xf32>
    %c0_4 = arith.constant 0 : index
    %c0_5 = arith.constant 0 : index
    %5 = vector.load %arg3[%c0_4, %c0_5] : memref<1x128xf32, #tpu.memory_space<vmem>>, vector<1x128xf32>
    %6 = vector.broadcast %5 : vector<1x128xf32> to vector<64x128xf32>
    %7 = arith.addf %4, %6 : vector<64x128xf32>
    %8 = arith.truncf %7 : vector<64x128xf32> to vector<64x128xbf16>
    %cst_6 = arith.constant 5.000000e-01 : bf16
    %9 = vector.broadcast %cst_6 : bf16 to vector<64x128xbf16>
    %10 = arith.mulf %9, %8 : vector<64x128xbf16>
    %cst_7 = arith.constant 5.000000e-01 : bf16
    %11 = vector.broadcast %cst_7 : bf16 to vector<64x128xbf16>
    %12 = arith.mulf %11, %8 : vector<64x128xbf16>
    %13 = math.tanh %12 : vector<64x128xbf16>
    %cst_8 = arith.constant 1.000000e+00 : bf16
    %14 = vector.broadcast %cst_8 : bf16 to vector<64x128xbf16>
    %15 = arith.addf %14, %13 : vector<64x128xbf16>
    %16 = arith.mulf %10, %15 : vector<64x128xbf16>
    %c0_9 = arith.constant 0 : index
    %c0_10 = arith.constant 0 : index
    %17 = vector.load %arg4[%c0_9, %c0_10] : memref<128x128xbf16, #tpu.memory_space<vmem>>, vector<128x128xbf16>
    %cst_11 = arith.constant dense<0.000000e+00> : vector<64x128xf32>
    %18 = tpu.matmul %16, %17, %cst_11 {dimension_numbers = #tpu.dot_dimension_numbers<[1], [0], [0], [1], [0, 0, 1, 1], [], []>} : vector<64x128xbf16>, vector<128x128xbf16>, vector<64x128xf32> -> vector<64x128xf32>
    %c0_12 = arith.constant 0 : index
    %c0_13 = arith.constant 0 : index
    %19 = vector.load %arg5[%c0_12, %c0_13] : memref<1x128xf32, #tpu.memory_space<vmem>>, vector<1x128xf32>
    %20 = vector.broadcast %19 : vector<1x128xf32> to vector<64x128xf32>
    %21 = arith.addf %18, %20 : vector<64x128xf32>
    %22 = arith.truncf %21 : vector<64x128xf32> to vector<64x128xbf16>
    %cst_14 = arith.constant 5.000000e-01 : bf16
    %23 = vector.broadcast %cst_14 : bf16 to vector<64x128xbf16>
    %24 = arith.mulf %23, %22 : vector<64x128xbf16>
    %cst_15 = arith.constant 5.000000e-01 : bf16
    %25 = vector.broadcast %cst_15 : bf16 to vector<64x128xbf16>
    %26 = arith.mulf %25, %22 : vector<64x128xbf16>
    %27 = math.tanh %26 : vector<64x128xbf16>
    %cst_16 = arith.constant 1.000000e+00 : bf16
    %28 = vector.broadcast %cst_16 : bf16 to vector<64x128xbf16>
    %29 = arith.addf %28, %27 : vector<64x128xbf16>
    %30 = arith.mulf %24, %29 : vector<64x128xbf16>
    %31 = vector.shape_cast %30 : vector<64x128xbf16> to vector<8x8x128xbf16>
    %c0_17 = arith.constant 0 : index
    %c0_18 = arith.constant 0 : index
    %32 = vector.load %arg6[%c0_17, %c0_18] : memref<1x128xf32, #tpu.memory_space<vmem>>, vector<1x128xf32>
    %33 = vector.shape_cast %32 : vector<1x128xf32> to vector<1x1x128xf32>
    %34 = arith.truncf %33 : vector<1x1x128xf32> to vector<1x1x128xbf16>
    %35 = vector.broadcast %34 : vector<1x1x128xbf16> to vector<8x8x128xbf16>
    %36 = arith.mulf %31, %35 : vector<8x8x128xbf16>
    %37 = arith.extf %36 : vector<8x8x128xbf16> to vector<8x8x128xf32>
    %cst_19 = arith.constant dense<0.000000e+00> : vector<8x8xf32>
    %38 = vector.multi_reduction <add>, %37, %cst_19 [2] : vector<8x8x128xf32> to vector<8x8xf32>
    %c0_20 = arith.constant 0 : index
    %c0_21 = arith.constant 0 : index
    %39 = vector.load %arg7[%c0_20, %c0_21] : memref<8x128xf32, #tpu.memory_space<vmem>>, vector<8x128xf32>
    %cst_22 = arith.constant dense<0.000000e+00> : vector<8x128xf32>
    %40 = tpu.matmul %38, %39, %cst_22 {dimension_numbers = #tpu.dot_dimension_numbers<[1], [0], [0], [1], [0, 0, 1, 1], [], []>} : vector<8x8xf32>, vector<8x128xf32>, vector<8x128xf32> -> vector<8x128xf32>
    %c0_23 = arith.constant 0 : index
    %c0_24 = arith.constant 0 : index
    %41 = vector.load %arg8[%c0_23, %c0_24] : memref<8x128xf32, #tpu.memory_space<vmem>>, vector<8x128xf32>
    tpu.vector_store %arg8[%c0_23, %c0_24], %40 {strides = array<i32>} : memref<8x128xf32, #tpu.memory_space<vmem>>, vector<8x128xf32>,
    return
  }
  func.func @transform_0(%arg0: i32) -> (i32, i32, i32) {
    %c0_i32 = arith.constant 0 : i32
    %c0_i32_0 = arith.constant 0 : i32
    %c0_i32_1 = arith.constant 0 : i32
    return %arg0, %c0_i32, %c0_i32_0 : i32, i32, i32
  }
  func.func @transform_1(%arg0: i32) -> (i32, i32) {
    %c0_i32 = arith.constant 0 : i32
    %c0_i32_0 = arith.constant 0 : i32
    %c0_i32_1 = arith.constant 0 : i32
    return %c0_i32, %c0_i32_0 : i32, i32
  }
  func.func @transform_2(%arg0: i32) -> (i32, i32) {
    %c0_i32 = arith.constant 0 : i32
    %c0_i32_0 = arith.constant 0 : i32
    %c0_i32_1 = arith.constant 0 : i32
    return %c0_i32, %c0_i32_0 : i32, i32
  }
  func.func @transform_3(%arg0: i32) -> (i32, i32) {
    %c0_i32 = arith.constant 0 : i32
    %c0_i32_0 = arith.constant 0 : i32
    %c0_i32_1 = arith.constant 0 : i32
    return %c0_i32, %c0_i32_0 : i32, i32
  }
  func.func @transform_4(%arg0: i32) -> (i32, i32) {
    %c0_i32 = arith.constant 0 : i32
    %c0_i32_0 = arith.constant 0 : i32
    %c0_i32_1 = arith.constant 0 : i32
    return %c0_i32, %c0_i32_0 : i32, i32
  }
  func.func @transform_5(%arg0: i32) -> (i32, i32) {
    %c0_i32 = arith.constant 0 : i32
    %c0_i32_0 = arith.constant 0 : i32
    %c0_i32_1 = arith.constant 0 : i32
    return %c0_i32, %c0_i32_0 : i32, i32
  }
  func.func @transform_6(%arg0: i32) -> (i32, i32) {
    %c0_i32 = arith.constant 0 : i32
    %c0_i32_0 = arith.constant 0 : i32
    %c0_i32_1 = arith.constant 0 : i32
    return %c0_i32, %c0_i32_0 : i32, i32
  }
  func.func @transform_7(%arg0: i32) -> (i32, i32) {
    %c0_i32 = arith.constant 0 : i32
    %c0_i32_0 = arith.constant 0 : i32
    return %arg0, %c0_i32 : i32, i32
  }
}

</mosaic_0001>

<bundles_post_ra>
// kernel: tpu_custom_call.1
= control target key start
LH: loop header
LB: loop body
LE: loop exit
PB: predicated region body
PF: predicated region fallthrough
CT: control target
= control target key end

     0   :  { %12 = vsyncpa [#allocation3], 0  ;;  %s1659_s0 = inlined_call_operand.hbm [shape: f32[16,8,128], index: 0, kind: input, shape index: {}]   ;;  %s1660_s1 = inlined_call_operand.hbm [shape: bf16[128,128], index: 1, kind: input, shape index: {}]   ;;  %s1661_s2 = inlined_call_operand.vmem [shape: f32[1,128], index: 2, kind: input, shape index: {}]   ;;  %s1662_s3 = inlined_call_operand.hbm [shape: bf16[128,128], index: 3, kind: input, shape index: {}]   ;;  %s1663_s4 = inlined_call_operand.vmem [shape: f32[1,128], index: 4, kind: input, shape index: {}]   ;;  %s1664_s5 = inlined_call_operand.vmem [shape: f32[1,128], index: 5, kind: input, shape index: {}]   ;;  %s1665_s6 = inlined_call_operand.vmem [shape: f32[8,128], index: 6, kind: input, shape index: {}]   ;;  %s1666_s7 = inlined_call_operand.hbm [shape: f32[16,128], index: 7, kind: output, shape index: {}]  }
   0x1   :  { %14 = vsyncpa [#allocation3 + $0x1], 0 }
   0x2   :  { %15 = vsyncpa [#allocation6], 0 }
   0x3   :  { %16 = vsyncpa [#allocation4], 0 }
   0x4   :  { %18 = vsyncpa [#allocation4 + $0x1], 0  ;;  %s1394_s24 = smov 0   ;;  %s1396_s25 = smov 0  }
   0x5   :  { %s1398_s26 = smov 0   ;;  %s1400_s27 = smov 0  }
   0x6 LB: > { %s1415_s28 = sadd.s32 4294967295, %s1342_s27   ;;  %s957_s29 = sadd.s32 4294967294, %s1342_s27   ;;  %s1342_s27 = sphi %s1400_s27, %s1686_s27   ;;  %s1338_s26 = sphi %s1398_s26, %s1685_s26   ;;  %s1334_s25 = sphi %s1396_s25, %s1684_s25   ;;  %s1330_s24 = sphi %s1394_s24, %s1683_s24  }
   0x7   : > { %p44_p0 = scmp.ne.s32.totalorder %s1334_s25, %s1330_s24  ;;  %p1667_p1 = scmp.eq.s32.totalorder %s1415_s28, 0 }
   0x8   : > { %p200_p3 = scmp.eq.s32.totalorder %s957_s29, 1  ;;  %p958_p5 = scmp.ge.s32.totalorder %s1342_s27, 1 }
   0x9   : > { %p1424_p4 = por %p1667_p1, %p44_p0  ;;  %p207_p7 = scmp.lt.s32.totalorder %s1342_s27, 3 }
   0xa   : > { %p1429_p6 = por %p200_p3, %p44_p0  ;;  %s1344_s10 = smov [#allocation5]  }
   0xb   : > { %s1670_s30 = scalar_select %p1424_p4, 1, 0 }
   0xc   : > { %s1671_s8 = scalar_select %p1429_p6, 1, 0 }
   0xd   : > { %p1434_p8 = pnand %p958_p5, %p207_p7  ;;  %s219_s11 = sshll.u32 %s1344_s10, 4  ;;  %s1438_s11 = int_to_ptr.vmem [resolvable:$true] %s219_s11 }
   0xe   : > { %s1345_s13 = smov [#allocation7]   ;;  %s1186_s17 = scalar_lea.hbm %s1660_s1, 1024 }
   0xf   : > { %p1093_p9 = pneg %p1434_p8  ;;  %s235_s14 = sshll.u32 %s1345_s13, 4  ;;  %s1449_s14 = int_to_ptr.vmem [resolvable:$true] %s235_s14 }
  0x10   : > { %p1187_p12 = scmp.ne.s32.totalorder %s1660_s1, %s1186_s17  ;;  %p1193_p5 = scmp.lt.u32.totalorder %s1186_s17, %s1660_s1 }
  0x11   : > { %p1445_p11 = pnand %p1093_p9, %p1667_p1 }
  0x13   : > { %p1188_p13 = pneg %p1445_p11 }
  0x15   : > { %p1189_p0 = pnand %p1188_p13, %p1187_p12 }
  0x17   : > { %p1190_p3 = pneg %p1189_p0 }
  0x19   : > { %p1195_p7 = pnand %p1193_p5, %p1190_p3 }
  0x1b   : > { %1198 = shalt.err (!%p1195_p7)
}
  0x1c   : > { %s1199_s22 = scalar_lea.vmem %s1438_s11, 1024  ;;  %p1207_p2 = scmp.lt.s32.totalorder %s1438_s11, %s1438_s11 }
  0x1d   : > { %p1200_p9 = scmp.ne.s32.totalorder %s1438_s11, %s1199_s22  ;;  %p1208_p12 = scmp.lt.s32.totalorder %s1199_s22, %s1199_s22 }
  0x1f   : > { %p1202_p10 = pnand %p1200_p9, %p1188_p13  ;;  %p1209_p0 = por %p1208_p12, %p1207_p2 }
  0x21   : > { %p1203_p1 = pneg %p1202_p10 }
  0x23   : > { %p1210_p6 = pnand %p1209_p0, %p1203_p1 }
  0x25   : > { %1213 = shalt.err (!%p1210_p6)
}
  0x26   : > { %s1346_s23 = smov 64   ;;  %s1347_s29 = smov 4  }
  0x27   : > { %1096 = dma.hbm_to_vmem [thread:$0]  (!%p1445_p11), %s1660_s1, 1024, %s1438_s11, [#allocation6], %s1346_s23, %s1346_s23, %s1347_s29  }
  0x28   : > { %s1214_s17 = scalar_lea.hbm %s1662_s3, 1024 }
  0x29   : > { %p1215_p2 = scmp.ne.s32.totalorder %s1662_s3, %s1214_s17  ;;  %p1221_p10 = scmp.lt.u32.totalorder %s1214_s17, %s1662_s3 }
  0x2b   : > { %p1217_p1 = pnand %p1215_p2, %p1188_p13 }
  0x2d   : > { %p1218_p6 = pneg %p1217_p1 }
  0x2f   : > { %p1223_p3 = pnand %p1221_p10, %p1218_p6 }
  0x31   : > { %1226 = shalt.err (!%p1223_p3)
}
  0x32   : > { %s1227_s11 = scalar_lea.vmem %s1449_s14, 1024  ;;  %p1235_p12 = scmp.lt.s32.totalorder %s1449_s14, %s1449_s14 }
  0x33   : > { %p1228_p5 = scmp.ne.s32.totalorder %s1449_s14, %s1227_s11  ;;  %p1236_p0 = scmp.lt.s32.totalorder %s1227_s11, %s1227_s11 }
  0x35   : > { %p1230_p7 = pnand %p1228_p5, %p1188_p13  ;;  %p1237_p2 = por %p1236_p0, %p1235_p12 }
  0x37   : > { %p1231_p9 = pneg %p1230_p7 }
  0x39   : > { %p1238_p1 = pnand %p1237_p2, %p1231_p9 }
  0x3b   : > { %1241 = shalt.err (!%p1238_p1)
}
  0x3c   : > { %1099 = dma.hbm_to_vmem [thread:$0]  (!%p1445_p11), %s1662_s3, 1024, %s1449_s14, [#allocation6], %s1346_s23, %s1346_s23, %s1347_s29  }
  0x3d   : > { %s1504_s13 = sadd.s32 1, %s1342_s27   ;;  %s31_s12 = sadd.s32 1, %s1338_s26 }
  0x3e   : > { %s28_s15 = ssub.s32 %s1342_s27, %s1504_s13  ;;  %p38_p13 = scmp.ne.s32.totalorder %s1338_s26, %s1334_s25 }
  0x3f   : > { %p29_p6 = scmp.eq.s32.totalorder %s28_s15, 0  ;;  %p39_p10 = scmp.eq.s32.totalorder %s1342_s27, 0 }
  0x40   : > { %p1674_p3 = scmp.eq.s32.totalorder %s1415_s28, 1  ;;  %p1110_p7 = scmp.lt.s32.totalorder %s1342_s27, 2 }
  0x41   : > { %s1520_s17 = scalar_select %p29_p6, %s1338_s26, %s31_s12  }
  0x42   : > { %p1514_p5 = por %p1674_p3, %p38_p13  ;;  %p40_p9 = por %p39_p10, %p38_p13 }
  0x43   : > { %s258_s18 = sand.u32 1, %s1338_s26   ;;  %s1001_s14 = sshll.u32 %s1342_s27, 10 }
  0x44   : > { %s1675_s16 = scalar_select %p1514_p5, 1, 0 }
  0x45   : > { %s962_s19 = sshll.u32 %s258_s18, 6  ;;  %s1527_s20 = scalar_lea.hbm %s1659_s0, %s1001_s14 }
  0x46   : > { %s262_s21 = scalar_lea.vmem [#allocation2], %s962_s19  ;;  %p1531_p11 = pnand %p1110_p7, %p40_p9 }
  0x47   : > { %s269_s11 = sshll.u32 %s262_s21, 4  ;;  %s1535_s10 = scalar_lea.sflag [#allocation3], %s258_s18  ;;  %s1529_s11 = int_to_ptr.vmem [resolvable:$true] %s269_s11 }
  0x48   : > { %s1242_s12 = scalar_lea.hbm %s1527_s20, 1024  ;;  %p1244_p0 = pneg %p1531_p11 }
  0x49   : > { %p1243_p12 = scmp.ne.s32.totalorder %s1527_s20, %s1242_s12  ;;  %s1247_s14 = scalar_lea.hbm %s1659_s0, 2048 }
  0x4a   : > { %p1248_p13 = scmp.lt.u32.totalorder %s1527_s20, %s1659_s0  ;;  %p1249_p6 = scmp.lt.u32.totalorder %s1247_s14, %s1242_s12 }
  0x4b   : > { %p1245_p2 = pnand %p1244_p0, %p1243_p12  ;;  %p1251_p3 = scmp.lt.u32.totalorder %s1242_s12, %s1527_s20 }
  0x4c   : > { %p1250_p10 = por %p1249_p6, %p1248_p13 }
  0x4d   : > { %p1246_p1 = pneg %p1245_p2 }
  0x4e   : > { %p1252_p7 = por %p1251_p3, %p1250_p10 }
  0x50   : > { %p1253_p9 = pnand %p1252_p7, %p1246_p1 }
  0x52   : > { %1256 = shalt.err (!%p1253_p9)
}
  0x53   : > { %s1257_s18 = scalar_lea.vmem %s1529_s11, 1024  ;;  %s1348_s21 = smov [#allocation2]  }
  0x54   : > { %p1258_p12 = scmp.ne.s32.totalorder %s1529_s11, %s1257_s18  ;;  %s1262_s15 = sshll.u32 %s1348_s21, 4  ;;  %s1263_s15 = int_to_ptr.vmem [resolvable:$false] %s1262_s15 }
  0x55   : > { %s1264_s19 = scalar_lea.vmem %s1263_s15, 2048  ;;  %p1265_p4 = scmp.lt.s32.totalorder %s1529_s11, %s1263_s15 }
  0x56   : > { %p1260_p2 = pnand %p1258_p12, %p1244_p0  ;;  %p1266_p13 = scmp.lt.s32.totalorder %s1264_s19, %s1257_s18 }
  0x58   : > { %p1261_p5 = pneg %p1260_p2  ;;  %p1267_p6 = por %p1266_p13, %p1265_p4 }
  0x5a   : > { %p1268_p10 = pnand %p1267_p6, %p1261_p5 }
  0x5c   : > { %1271 = shalt.err (!%p1268_p10)
}
  0x5d   : > { %s1349_s12 = smov 128   ;;  %s1350_s14 = smov 8  }
  0x5e   : > { %1103 = dma.hbm_to_vmem [thread:$0]  (!%p1531_p11), %s1527_s20, 1024, %s1529_s11, %s1535_s10, %s1349_s12, %s1349_s12, %s1350_s14  }
  0x5f   : > { %281 = sbr.rel (%p1434_p8) target bundleno = 1004 (0x3ec), region = 48  ;;  %s1566_s23 = sand.u32 (!%p1434_p8), 1, %s1334_s25  }
  0x60   : > { %s966_s29 = sshll.u32 (!%p1434_p8), %s1566_s23, 6  ;;  %s284_s18 = scalar_lea.sflag (!%p1434_p8), [#allocation3], %s1566_s23 }
  0x61   : > { %s1570_s21 = scalar_lea.vmem (!%p1434_p8), [#allocation2], %s966_s29  ;;  %p1677_p4 = scmp.ne.s32.totalorder (!%p1434_p8), %s1670_s30, 0 }
  0x66   : > { %1317 = dma.done.wait (%p1677_p4), %s284_s18, 1024  }
  0x67   : > { %1319 = vsyncadd (%p1677_p4), %s284_s18, 4294966272  ;;  %p1678_p5 = scmp.eq.s32.totalorder %s1415_s28, 0 }
  0x69   : > { %1321 = dma.done.wait (%p1678_p5), [#allocation6], 2048   ;;  %p1679_p8 = pmov %p1678_p5 }
  0x6a   : > { %v1154_v0 = vld [vmem:[#allocation5] sm:$0xff]   ;;  %v1155_v1 = vld [vmem:[#allocation5 + $0x8] sm:$0xff]   ;;  %v1156_v2 = vld [vmem:[#allocation5 + $0x10] sm:$0xff]   ;;  %vm1352_vm0 = vmmov 0   ;;  %vm766_vm1 = vcmask 1041409   ;;  %vm768_vm2 = vcmask 1042434  }
  0x6b   : > { %1323 = vsyncadd (%p1679_p8), [#allocation6], 4294965248  ;;  %1028 = vmatprep.subr.bf16.mxu0 %v1154_v0  ;;  %v1157_v3 = vld [vmem:[#allocation5 + $0x18] sm:$0xff]   ;;  %v330_v4 = vld [vmem:[%s1570_s21] sm:$0xff]  ;;  %vm770_vm3 = vcmask 1043459   ;;  %vm772_vm4 = vcmask 1044484  }
  0x6c   : > { %1029 = vmatpush3.bf16.msra.mxu0 %v1154_v0  ;;  %v331_v5 = vld [vmem:[%s1570_s21 + $0x8] sm:$0xff]  ;;  %v1158_v7 = vld [vmem:[#allocation5 + $0x20] sm:$0xff]   ;;  %v1160_v11 = vld [vmem:[#allocation5 + $0x30] sm:$0xff]   ;;  %vm774_vm5 = vcmask 1045509   ;;  %vm776_vm6 = vcmask 1046534   ;;  %vm778_vm7 = vcmask 1047559  }
  0x6d   : > { %1030 = vmatprep.subr.bf16.mxu0 %v1155_v1  ;;  %v338_v6 = vpack.c.bf16 %v331_v5, %v330_v4  ;;  %v1162_v8 = vld [vmem:[#allocation7] sm:$0xff]   ;;  %v1163_v9 = vld [vmem:[#allocation7 + $0x8] sm:$0xff]   ;;  %v1161_v12 = vld [vmem:[#allocation5 + $0x38] sm:$0xff]   ;;  %vm780_vm8 = vcmask 64512   ;;  %s969_s12 = sshll.u32 %s1566_s23, 3  ;;  %s998_s18 = sshll.u32 %s1415_s28, 7 }
  0x6e   : > { %1052 = vmatprep.subr.bf16.mxu1 %v1162_v8  ;;  %v1159_v10 = vld [vmem:[#allocation5 + $0x28] sm:$0xff]   ;;  %v332_v13 = vld [vmem:[%s1570_s21 + $0x10] sm:$0xff]  ;;  %v333_v14 = vld [vmem:[%s1570_s21 + $0x18] sm:$0xff]  ;;  %s325_s14 = scalar_lea.vmem [#allocation8], %s969_s12  ;;  %s1617_s9 = scalar_lea.hbm %s1666_s7, %s998_s18 }
  0x6f   : > { %1044 = vmatprep.mubr.bf16.mxu0 %v338_v6  ;;  %1053 = vmatpush3.bf16.msra.mxu1 %v1162_v8  ;;  %v334_v15 = vld [vmem:[%s1570_s21 + $0x20] sm:$0xff]  ;;  %v335_v16 = vld [vmem:[%s1570_s21 + $0x28] sm:$0xff]  ;;  %v339_v17 = vpack.c.bf16 %v333_v14, %v332_v13  ;;  %v336_v19 = vld [vmem:[%s1570_s21 + $0x30] sm:$0xff]  ;;  %s868_s29 = sshll.u32 %s325_s14, 4  ;;  %s855_s20 = scalar_lea.sflag [#allocation4], %s1566_s23  ;;  %s1612_s29 = int_to_ptr.vmem [resolvable:$true] %s868_s29 }
  0x70   : > { %1031 = vmatpush3.bf16.msra.mxu0 %v1155_v1  ;;  %1054 = vmatprep.subr.bf16.mxu1 %v1163_v9  ;;  %v340_v18 = vpack.c.bf16 %v335_v16, %v334_v15  ;;  %v337_v20 = vld [vmem:[%s1570_s21 + $0x38] sm:$0xff]  ;;  %v1164_v22 = vld [vmem:[#allocation7 + $0x10] sm:$0xff]   ;;  %v1166_v24 = vld [vmem:[#allocation7 + $0x20] sm:$0xff]   ;;  %v687_v1 = vlaneseq  ;;  %s1272_s11 = scalar_lea.vmem %s1612_s29, 128  ;;  %p1680_p0 = scmp.ne.s32.totalorder %s1675_s16, 0 }
  0x71   : > { %1032 = vmatprep.subr.bf16.mxu0 %v1156_v2  ;;  %v341_v21 = vpack.c.bf16 %v337_v20, %v336_v19  ;;  %v1165_v23 = vld [vmem:[#allocation7 + $0x18] sm:$0xff]   ;;  %v1167_v25 = vld [vmem:[#allocation7 + $0x28] sm:$0xff]   ;;  %v1168_v26 = vld [vmem:[#allocation7 + $0x30] sm:$0xff]   ;;  %p1273_p11 = scmp.ne.s32.totalorder %s1612_s29, %s1272_s11  ;;  %s1353_s28 = smov [#allocation8]  }
  0x72   : > { %v1169_v27 = vld [vmem:[#allocation7 + $0x38] sm:$0xff]   ;;  %v970_v29 = vld [vmem:[%s1661_s2] ss:$0 sm:$0xff]  ;;  %s1276_s22 = sshll.u32 %s1353_s28, 4  ;;  %s1277_s22 = int_to_ptr.vmem [resolvable:$false] %s1276_s22 }
  0x73   : > { %1055 = vmatpush3.bf16.msra.mxu1 %v1163_v9  ;;  %v979_v6 = vld [vmem:[%s1663_s4] ss:$0 sm:$0xff]  ;;  %p1274_p1 = pnand %p1273_p11, %p1680_p0  ;;  %s1278_s10 = scalar_lea.vmem %s1277_s22, 256 }
  0x74   : > { %1033 = vmatpush3.bf16.msra.mxu0 %v1156_v2  ;;  %1056 = vmatprep.subr.bf16.mxu1 %v1164_v22  ;;  %v688_v2 = vshrl.u32 %v687_v1, 7  ;;  %p1279_p7 = scmp.lt.s32.totalorder %s1612_s29, %s1277_s22  ;;  %p1280_p9 = scmp.lt.s32.totalorder %s1278_s10, %s1272_s11 }
  0x75   : > { %1034 = vmatprep.subr.bf16.mxu0 %v1157_v3  ;;  %p1275_p3 = pneg %p1274_p1 }
  0x76   : > { %p1281_p12 = por %p1280_p9, %p1279_p7 }
  0x77   : > { %1057 = vmatpush3.bf16.msra.mxu1 %v1164_v22 }
  0x78   : > { %1035 = vmatpush3.bf16.msra.mxu0 %v1157_v3  ;;  %1058 = vmatprep.subr.bf16.mxu1 %v1165_v23  ;;  %v733_v3 = vand.u32 127, %v687_v1  ;;  %p1282_p2 = pnand %p1281_p12, %p1275_p3 }
  0x79   : > { %1036 = vmatprep.subr.bf16.mxu0 %v1158_v7 }
  0x7a   : > { %v1591_v4 = vsub.s32 %v733_v3, %v688_v2 }
  0x7b   : > { %1059 = vmatpush3.bf16.msra.mxu1 %v1165_v23 }
  0x7c   : > { %1037 = vmatpush3.bf16.msra.mxu0 %v1158_v7  ;;  %1060 = vmatprep.subr.bf16.mxu1 %v1166_v24 }
  0x7d   : > { %1038 = vmatprep.subr.bf16.mxu0 %v1159_v10 }
  0x7f   : > { %1061 = vmatpush3.bf16.msra.mxu1 %v1166_v24 }
  0x80   : > { %1039 = vmatpush3.bf16.msra.mxu0 %v1159_v10  ;;  %1062 = vmatprep.subr.bf16.mxu1 %v1167_v25 }
  0x81   : > { %1040 = vmatprep.subr.bf16.mxu0 %v1160_v11 }
  0x83   : > { %1063 = vmatpush3.bf16.msra.mxu1 %v1167_v25 }
  0x84   : > { %1041 = vmatpush3.bf16.msra.mxu0 %v1160_v11  ;;  %1064 = vmatprep.subr.bf16.mxu1 %v1168_v26 }
  0x85   : > { %1042 = vmatprep.subr.bf16.mxu0 %v1161_v12 }
  0x87   : > { %1065 = vmatpush3.bf16.msra.mxu1 %v1168_v26  ;;  %v682_v26 = vld [vmem:[%s1664_s5] sm:$0x1] }
  0x88   : > { %1043 = vmatpush3.bf16.msra.mxu0 %v1161_v12  ;;  %1066 = vmatprep.subr.bf16.mxu1 %v1169_v27 }
  0x8b   : > { %1045 = vmatmul.mubr.bf16.vlgmr.msra.gmra.mrb[0].mxu0 %v339_v17  ;;  %1067 = vmatpush3.bf16.msra.mxu1 %v1169_v27 }
  0x8c   : > { %1048 = vmatprep.mubr.bf16.mxu0 %v340_v18 }
  0x93   : > { %1049 = vmatmul.mubr.bf16.gmra.mrb[4].mxu0 %v341_v21 }
 0x15e   : > { %v1046_v28 = vpop.f32.mrb[0].mxu0 }
 0x15f   : > { %v447_v30 = vpop.f32.mrb[1].mxu0  ;;  %v456_v32 = vadd.f32 %v1046_v28, %v970_v29 }
 0x160   : > { %v1047_v31 = vpop.f32.mrb[2].mxu0  ;;  %v448_v35 = vadd.f32 %v970_v29, %v447_v30  ;;  %v683_v30 = vpack.c.bf16 %v682_v26, %v682_v26 }
 0x161   : > { %v459_v33 = vadd.f32 %v1047_v31, %v970_v29  ;;  %v450_v34 = vpop.f32.mrb[3].mxu0 }
 0x162   : > { %v451_v36 = vadd.f32 %v970_v29, %v450_v34 }
 0x163   : > { %v479_v37 = vpack.c.bf16 %v459_v33, %v456_v32  ;;  %v685_v32 = vpack.i.b16 %v683_v30, %v683_v30  ;;  %v689_v33 = vsub.s32 0, %v688_v2 }
 0x164   : > { %v478_v38 = vpack.c.bf16 %v451_v36, %v448_v35 }
 0x165   : > { %v483_v39 = vmul.bf16 1056980736, %v479_v37 }
 0x166   : > { %v1050_v40 = vpop.f32.mrb[4].mxu0  ;;  %v482_v41 = vmul.bf16 1056980736, %v478_v38 }
 0x167   : > { %1170 = vtanh.bf16 %v483_v39  ;;  %v463_v42 = vpop.f32.mrb[5].mxu0  ;;  %v472_v44 = vadd.f32 %v1050_v40, %v970_v29 }
 0x168   : > { %v1051_v43 = vpop.f32.mrb[6].mxu0  ;;  %1172 = vtanh.bf16 %v482_v41  ;;  %v464_v47 = vadd.f32 %v970_v29, %v463_v42 }
 0x169   : > { %v475_v45 = vadd.f32 %v1051_v43, %v970_v29  ;;  %v466_v46 = vpop.f32.mrb[7].mxu0 }
 0x16a   : > { %v467_v48 = vadd.f32 %v970_v29, %v466_v46 }
 0x16b   : > { %v481_v49 = vpack.c.bf16 %v475_v45, %v472_v44 }
 0x16c   : > { %v480_v50 = vpack.c.bf16 %v467_v48, %v464_v47 }
 0x16d   : > { %v485_v51 = vmul.bf16 1056980736, %v481_v49 }
 0x16e   : > { %v484_v52 = vmul.bf16 1056980736, %v480_v50 }
 0x16f   : > { %1174 = vtanh.bf16 %v485_v51 }
 0x170   : > { %1176 = vtanh.bf16 %v484_v52 }
 0x172   : > { %v1171_v53 = vpop.eup %1170 }
 0x173   : > { %v1173_v54 = vpop.eup %1172  ;;  %v491_v55 = vadd.bf16 1065369472, %v1171_v53 }
 0x174   : > { %v490_v56 = vadd.bf16 1065369472, %v1173_v54 }
 0x175   : > { %v495_v58 = vmul.bf16 %v491_v55, %v483_v39  ;;  %v690_v39 = vrot.slane %v685_v32, %v689_v33 }
 0x176   : > { %v494_v57 = vmul.bf16 %v490_v56, %v482_v41 }
 0x178   : > { %1068 = vmatprep.mubr.bf16.mxu1 %v494_v57 }
 0x179   : > { %1069 = vmatmul.mubr.bf16.vlgmr.msra.gmra.mrb[0].mxu1 %v495_v58 }
 0x17a   : > { %v1175_v59 = vpop.eup %1174 }
 0x17b   : > { %v1177_v60 = vpop.eup %1176  ;;  %v493_v61 = vadd.bf16 1065369472, %v1175_v59 }
 0x17c   : > { %v492_v62 = vadd.bf16 1065369472, %v1177_v60 }
 0x17d   : > { %v497_v0 = vmul.bf16 %v493_v61, %v485_v51 }
 0x17e   : > { %v496_v63 = vmul.bf16 %v492_v62, %v484_v52 }
 0x180   : > { %1072 = vmatprep.mubr.bf16.mxu1 %v496_v63 }
 0x181   : > { %1073 = vmatmul.mubr.bf16.gmra.mrb[4].mxu1 %v497_v0 }
 0x24c   : > { %v1070_v5 = vpop.f32.mrb[0].mxu1 }
 0x24d   : > { %v603_v7 = vpop.f32.mrb[1].mxu1  ;;  %v612_v9 = vadd.f32 %v1070_v5, %v979_v6 }
 0x24e   : > { %v1071_v8 = vpop.f32.mrb[2].mxu1  ;;  %v604_v12 = vadd.f32 %v979_v6, %v603_v7 }
 0x24f   : > { %v615_v10 = vadd.f32 %v1071_v8, %v979_v6  ;;  %v606_v11 = vpop.f32.mrb[3].mxu1  ;;  %v1351_v8 = vmov 0.0  }
 0x250   : > { %v607_v13 = vadd.f32 %v979_v6, %v606_v11  ;;  %1076 = vmatprep.subr.mxu0 %v1351_v8  ;;  %1078 = vmatprep.mubr.msk.f32.mxu0 %vm1352_vm0, %v1351_v8 }
 0x251   : > { %v635_v14 = vpack.c.bf16 %v615_v10, %v612_v9  ;;  %v723_v9 = vld [vmem:[%s1665_s6] sm:$0xff] }
 0x252   : > { %v634_v15 = vpack.c.bf16 %v607_v13, %v604_v12  ;;  %1077 = vmatpush3.msra.mxu0 %v723_v9 }
 0x253   : > { %v639_v16 = vmul.bf16 1056980736, %v635_v14 }
 0x254   : > { %v638_v17 = vmul.bf16 1056980736, %v634_v15  ;;  %v1074_v18 = vpop.f32.mrb[4].mxu1 }
 0x255   : > { %1178 = vtanh.bf16 %v639_v16  ;;  %v619_v19 = vpop.f32.mrb[5].mxu1  ;;  %v628_v21 = vadd.f32 %v1074_v18, %v979_v6 }
 0x256   : > { %1180 = vtanh.bf16 %v638_v17  ;;  %v1075_v20 = vpop.f32.mrb[6].mxu1  ;;  %v620_v24 = vadd.f32 %v979_v6, %v619_v19 }
 0x257   : > { %v631_v22 = vadd.f32 %v1075_v20, %v979_v6  ;;  %v622_v23 = vpop.f32.mrb[7].mxu1 }
 0x258   : > { %v623_v25 = vadd.f32 %v979_v6, %v622_v23 }
 0x259   : > { %v637_v27 = vpack.c.bf16 %v631_v22, %v628_v21 }
 0x25a   : > { %v636_v28 = vpack.c.bf16 %v623_v25, %v620_v24 }
 0x25b   : > { %v641_v29 = vmul.bf16 1056980736, %v637_v27 }
 0x25c   : > { %v640_v31 = vmul.bf16 1056980736, %v636_v28 }
 0x25d   : > { %1182 = vtanh.bf16 %v641_v29 }
 0x25e   : > { %1184 = vtanh.bf16 %v640_v31 }
 0x260   : > { %v1179_v34 = vpop.eup %1178 }
 0x261   : > { %v1181_v35 = vpop.eup %1180  ;;  %v647_v36 = vadd.bf16 1065369472, %v1179_v34 }
 0x262   : > { %v646_v37 = vadd.bf16 1065369472, %v1181_v35 }
 0x263   : > { %v651_v38 = vmul.bf16 %v647_v36, %v639_v16 }
 0x264   : > { %v650_v40 = vmul.bf16 %v646_v37, %v638_v17 }
 0x265   : > { %v990_v41 = vcombine.low %v651_v38, %v651_v38  ;;  %v991_v42 = vcombine.high %v651_v38, %v651_v38 }
 0x266   : > { %v988_v43 = vcombine.low %v650_v40, %v650_v40  ;;  %v989_v44 = vcombine.high %v650_v40, %v650_v40 }
 0x267   : > { %v693_v45 = vmul.bf16 %v990_v41, %v690_v39  ;;  %v694_v51 = vmul.bf16 %v991_v42, %v690_v39 }
 0x268   : > { %v1183_v46 = vpop.eup %1182  ;;  %v691_v47 = vmul.bf16 %v988_v43, %v690_v39  ;;  %v692_v52 = vmul.bf16 %v989_v44, %v690_v39 }
 0x269   : > { %v1185_v48 = vpop.eup %1184  ;;  %v649_v49 = vadd.bf16 1065369472, %v1183_v46  ;;  %v701_v50 = vunpack.c.l.bf16 %v693_v45  ;;  %v702_v57 = vunpack.c.l.bf16 %v694_v51 }
 0x26a   : > { %v648_v53 = vadd.bf16 1065369472, %v1185_v48  ;;  %v699_v54 = vunpack.c.l.bf16 %v691_v47  ;;  %v700_v58 = vunpack.c.l.bf16 %v692_v52 }
 0x26b   : > { %v653_v55 = vmul.bf16 %v649_v49, %v641_v29  ;;  %711 = vadd.xlane.f32.xlu1 %v701_v50 }
 0x26c   : > { %v652_v56 = vmul.bf16 %v648_v53, %v640_v31  ;;  %707 = vadd.xlane.f32.xlu0 %v699_v54 }
 0x26d   : > { %v995_v61 = vcombine.high %v653_v55, %v653_v55  ;;  %v994_v62 = vcombine.low %v653_v55, %v653_v55 }
 0x26e   : > { %v993_v59 = vcombine.high %v652_v56, %v652_v56  ;;  %v992_v60 = vcombine.low %v652_v56, %v652_v56 }
 0x26f   : > { %713 = vadd.xlane.f32.xlu1 %v702_v57  ;;  %v698_v3 = vmul.bf16 %v995_v61, %v690_v39  ;;  %v697_v5 = vmul.bf16 %v994_v62, %v690_v39 }
 0x270   : > { %709 = vadd.xlane.f32.xlu0 %v700_v58  ;;  %v696_v63 = vmul.bf16 %v993_v59, %v690_v39  ;;  %v695_v0 = vmul.bf16 %v992_v60, %v690_v39 }
 0x271   : > { %v706_v6 = vunpack.c.l.bf16 %v698_v3  ;;  %v705_v7 = vunpack.c.l.bf16 %v697_v5 }
 0x272   : > { %v704_v1 = vunpack.c.l.bf16 %v696_v63  ;;  %v703_v2 = vunpack.c.l.bf16 %v695_v0 }
 0x274   : > { %717 = vadd.xlane.f32.xlu1 %v704_v1  ;;  %715 = vadd.xlane.f32.xlu0 %v703_v2 }
 0x278   : > { %721 = vadd.xlane.f32.xlu1 %v706_v6  ;;  %719 = vadd.xlane.f32.xlu0 %v705_v7 }
 0x2f8   : > { %v712_v10 = vpop.xlane.xlu1 %711 }
 0x2f9   : > { %v708_v11 = vpop.xlane.xlu0 %707  ;;  %v745_v16 = vrot.slane %v712_v10, %v1591_v4 }
 0x2fa   : > { %v737_v14 = vrot.slane %v708_v11, %v1591_v4 }
 0x2fc   : > { %v714_v12 = vpop.xlane.xlu1 %713 }
 0x2fd   : > { %v710_v13 = vpop.xlane.xlu0 %709  ;;  %v749_v17 = vrot.slane %v714_v12, %v1591_v4 }
 0x2fe   : > { %v741_v15 = vrot.slane %v710_v13, %v1591_v4 }
 0x300   : > { %v767_v18 = vsel %vm766_vm1, %v741_v15, %v737_v14 }
 0x301   : > { %v769_v19 = vsel %vm768_vm2, %v745_v16, %v767_v18  ;;  %v718_v20 = vpop.xlane.xlu1 %717  ;;  %v716_v21 = vpop.xlane.xlu0 %715 }
 0x302   : > { %v771_v22 = vsel %vm770_vm3, %v749_v17, %v769_v19  ;;  %v753_v23 = vrot.slane %v716_v21, %v1591_v4  ;;  %v757_v24 = vrot.slane %v718_v20, %v1591_v4 }
 0x304   : > { %v773_v25 = vsel %vm772_vm4, %v753_v23, %v771_v22 }
 0x305   : > { %v722_v26 = vpop.xlane.xlu1 %721  ;;  %v720_v27 = vpop.xlane.xlu0 %719  ;;  %v775_v30 = vsel %vm774_vm5, %v757_v24, %v773_v25 }
 0x306   : > { %v765_v28 = vrot.slane %v722_v26, %v1591_v4  ;;  %v761_v29 = vrot.slane %v720_v27, %v1591_v4 }
 0x308   : > { %v777_v31 = vsel %vm776_vm6, %v761_v29, %v775_v30 }
 0x309   : > { %v779_v32 = vsel %vm778_vm7, %v765_v28, %v777_v31 }
 0x30a   : > { %1079 = vmatmul.mubr.msk.f32.vlgmr.msra.gmra.mrb[8].mxu0 %vm780_vm8, %v779_v32 }
 0x3dd   : > { %v849_v4 = vpop.f32.mrb[8].mxu0 }
 0x3de   : > { %853 = vst [vmem:[%s325_s14] sm:$0xff] %v849_v4  ;;  %v1080_v33 = vpop.f32.mrb[9].mxu0 }
 0x3df   : > { %1285 = shalt.err (!%p1282_p2)
}
 0x3e0   : > { %s1286_s23 = scalar_lea.hbm %s1617_s9, 128  ;;  %s1290_s12 = scalar_lea.hbm %s1666_s7, 256 }
 0x3e1   : > { %p1287_p13 = scmp.ne.s32.totalorder %s1617_s9, %s1286_s23  ;;  %p1291_p4 = scmp.lt.u32.totalorder %s1617_s9, %s1666_s7 }
 0x3e2   : > { %p1292_p5 = scmp.lt.u32.totalorder %s1290_s12, %s1286_s23  ;;  %p1294_p11 = scmp.lt.u32.totalorder %s1286_s23, %s1617_s9 }
 0x3e3   : > { %p1288_p6 = pnand %p1287_p13, %p1680_p0 }
 0x3e4   : > { %p1293_p8 = por %p1292_p5, %p1291_p4 }
 0x3e5   : > { %p1289_p10 = pneg %p1288_p6 }
 0x3e6   : > { %p1295_p1 = por %p1294_p11, %p1293_p8 }
 0x3e8   : > { %p1296_p3 = pnand %p1295_p1, %p1289_p10 }
 0x3ea   : > { %1299 = shalt.err (!%p1296_p3)
}
 0x3eb   : > { %1091 = dma.vmem_to_hbm [thread:$0]  (%p1680_p0), %s1612_s29, 128, %s1617_s9, %s855_s20  }
 0x3ec PF: > { %s880_s21 = sand.u32 1, %s1330_s24   ;;  %p1681_p7 = scmp.ne.s32.totalorder %s1671_s8, 0 }
 0x3ed   : > { %p1682_p9 = scmp.ge.s32.totalorder %s1342_s27, 2  ;;  %s881_s30 = scalar_lea.sflag [#allocation4], %s880_s21 }
 0x3ef   : > { %p1105_p12 = pnand %p1682_p9, %p1681_p7 }
 0x3f1   : > { %1325 = dma.done.wait (!%p1105_p12), %s881_s30, 128  }
 0x3f2   : > { %1327 = vsyncadd (!%p1105_p12), %s881_s30, 4294967168  ;;  %p21_p2 = scmp.ge.s32.totalorder %s1504_s13, 4   ;;  %s1683_s24 = smov %s1334_s25 }
 0x3f3   : > { %s1684_s25 = smov %s1338_s26  ;;  %s1685_s26 = smov %s1520_s17 }
 0x3f4   : > { %s1686_s27 = smov %s1504_s13  ;;  %23 = sbr.rel (!%p21_p2) target bundleno = 6 (0x6), region = 101 }
 0x3fb   :  { %886 = vsyncpa [#allocation3], 1 }
 0x3fc   :  { %888 = vsyncpa [#allocation3 + $0x1], 1 }
 0x3fd   :  { %889 = vsyncpa [#allocation6], 1 }
 0x3fe   :  { %890 = vsyncpa [#allocation4], 1 }
 0x3ff   :  { %892 = vsyncpa [#allocation4 + $0x1], 1 }

</bundles_post_ra>
